<compile_context>
chip_gen: v7x
topology: tpu7x:2x2x1
jax: 0.10.0
libtpu: 0.0.40
codegen_flags: <defaults>
</compile_context>

<pallas_src>
import functools

import jax
import jax.numpy as jnp
from jax.experimental import pallas as pl
from jax.experimental.pallas import tpu as pltpu

_MIB = 1024 * 1024


# ---------------------------------------------------------------------------
# Kernel
# ---------------------------------------------------------------------------
def mean_pool_kernel(h_ref, m_ref, o_ref, *, t_s, s_pad):
    """One (batch-tile, hidden-tile, seq-tile) grid step.

    h_ref : (tB, tS, tH)      hidden-state tile for this (b, h, k) step
    m_ref : (tB, 1, S_pad)    float32 mask rows, VMEM-resident across k
    o_ref : (tB, 1, tH) f32   running masked sum; divided on the last k step
    """
    k = pl.program_id(2)

    @pl.when(k == 0)
    def _init():
        o_ref[...] = jnp.zeros_like(o_ref)

    h = h_ref[...]
    if t_s == s_pad:                              # single reduction step
        m = m_ref[...]
    else:                                         # this step's 128-aligned window
        start = pl.multiple_of(k * t_s, 128)
        m = m_ref[:, :, pl.ds(start, t_s)]

    # Fused mask-multiply + sequence reduction on the MXU with f32 accumulation:
    # (tB,1,tS) @ (tB,tS,tH) -> (tB,1,tH).  float32 activations use an exact
    # multi-pass matmul (huge MXU slack: the kernel is HBM-bound); bf16 stays
    # on the fast path.  (A non-{0,1} float mask is rounded to bf16 only for
    # bf16 activations.)
    precision = (jax.lax.Precision.HIGHEST
                 if h_ref.dtype == jnp.float32 else None)
    o_ref[...] += jax.lax.dot_general(
        m.astype(h.dtype), h,
        dimension_numbers=(((2,), (1,)), ((0,), (0,))),
        preferred_element_type=jnp.float32,
        precision=precision,
    )

    @pl.when(k == pl.num_programs(2) - 1)
    def _finalize():
        # Valid-token count over the resident mask rows (zero-padded positions
        # contribute 0), clamped like torch.clamp(sum_mask, min=1e-9).
        denom = jnp.maximum(jnp.sum(m_ref[...], axis=2, keepdims=True), 1e-9)
        o_ref[...] = o_ref[...] / denom


# ---------------------------------------------------------------------------
# Tile selection
# ---------------------------------------------------------------------------
def _tpu_budget():
    """(hidden-tile byte budget, vmem_limit_bytes) for the local TPU generation."""
    try:
        kind = jax.devices()[0].device_kind.lower()
    except Exception:
        kind = ""
    if "v7" in kind or "tpu7" in kind or "ironwood" in kind:
        # 64 MiB physical VMEM per TensorCore: ~12 MiB tiles, 2x buffered.
        return 12 * _MIB, 44 * _MIB
    if "v6" in kind or "trillium" in kind:
        return 12 * _MIB, 64 * _MIB
    if "v5 lite" in kind or "v5e" in kind or "v5lite" in kind:
        # v5e default scoped VMEM is only 16 MiB; raise it explicitly.
        return 6 * _MIB, 32 * _MIB
    # Unknown / older generation: conservative.
    return 4 * _MIB, 32 * _MIB


def _largest_divisor_leq(n, limit):
    """Largest divisor of n that is <= limit (at least 1)."""
    for d in range(max(min(n, limit), 1), 0, -1):
        if n % d == 0:
            return d
    return 1


def _largest_aligned_divisor(n, limit):
    """Largest multiple of 128 that divides n and is <= limit (None if none)."""
    best, d = None, 128
    while d <= n and d <= limit:
        if n % d == 0:
            best = d
        d += 128
    return best


def _choose_tiles(B, S, H, itemsize, budget):
    """Pick (tB, tS, tH, S_pad): ~budget-byte hidden blocks that are always legal."""
    # Batch tile: a divisor of B, <= 8, leaving >= 2 batch grid steps when
    # B >= 2 so v7x can shard the batch axis across its two TensorCores.
    tB = _largest_divisor_leq(B, min(8, B // 2)) if B >= 2 else 1

    # Hidden tile: full H unless even a (tB, 128, H) block overflows the
    # budget; shrink tB first, then tile H on 128-aligned boundaries.
    tH = H
    min_ts = min(S, 128)
    while tB > 1 and tB * min_ts * tH * itemsize > budget:
        tB = _largest_divisor_leq(B, tB - 1)
    if tB * min_ts * tH * itemsize > budget:
        tH = _largest_aligned_divisor(
            H, budget // max(tB * min_ts * itemsize, 1)) or H
        # TODO(synk): zero-pad very wide non-128-multiple H instead of falling
        # back to a full-H tile that can exceed the byte budget.

    target_ts = max(budget // max(tB * tH * itemsize, 1), 128)
    s_pad = S
    if S % 128 == 0:
        tS = _largest_aligned_divisor(S, target_ts)       # always >= 128 here
    elif S < 128:
        tS = S                                            # tiny ragged sequence
    else:
        # Unaligned S: prefer one whole-sequence step (shrinking tB if needed)
        # over zero-padding, which would copy the whole hidden tensor.
        tb_try = tB
        while tb_try > 1 and tb_try * S * tH * itemsize > budget:
            tb_try = _largest_divisor_leq(B, tb_try - 1)
        if tb_try * S * tH * itemsize <= budget:
            tB, tS = tb_try, S
        else:
            s_pad = -(-S // 128) * 128
            tS = _largest_aligned_divisor(s_pad, target_ts)
    return tB, tS, tH, s_pad


# ---------------------------------------------------------------------------
# Wrapper
# ---------------------------------------------------------------------------
@functools.partial(jax.jit, static_argnames=("tile_budget_bytes",))
def mean_pooling(last_hidden_state, attention_mask, *, tile_budget_bytes=None):
    """last_hidden_state: (B, S, H); attention_mask: (B, S) -> (B, H) float32."""
    B, S, H = last_hidden_state.shape
    itemsize = jnp.dtype(last_hidden_state.dtype).itemsize

    budget, vmem_limit = _tpu_budget()
    if tile_budget_bytes is not None:
        budget = int(tile_budget_bytes)

    # The full-sequence mask rows stay VMEM-resident per batch tile; carve
    # their (double-buffered) footprint out of the hidden-tile budget.
    mask_bytes = 8 * (-(-S // 128) * 128) * 4
    hidden_budget = max(budget - 2 * mask_bytes, budget // 2)
    # TODO(synk): for extremely long sequences (mask rows alone >> budget),
    # fall back to per-step mask blocks instead of a resident full-S mask.

    tB, tS, tH, s_pad = _choose_tiles(B, S, H, itemsize, hidden_budget)

    hidden = last_hidden_state
    mask = attention_mask.astype(jnp.float32)
    if s_pad != S:
        # Last-resort path for long, non-128-aligned S: zero-pad hidden (not
        # garbage -> no 0*NaN) and mask (padded rows contribute exactly 0).
        hidden = jnp.pad(hidden, ((0, 0), (0, s_pad - S), (0, 0)))
        mask = jnp.pad(mask, ((0, 0), (0, s_pad - S)))
    mask3 = mask.reshape(B, 1, s_pad)             # S on the dense lane axis

    grid = (B // tB, H // tH, s_pad // tS)        # reduction axis (S) last

    # Explicit VMEM budget (never rely on the scoped default): 2x-buffered
    # hidden tile + resident mask rows + resident f32 output tile + headroom.
    est = (2 * tB * tS * tH * itemsize + 2 * tB * s_pad * 4
           + 2 * tB * tH * 4 + 2 * _MIB)
    vmem_limit = int(max(vmem_limit, est))

    out = pl.pallas_call(
        functools.partial(mean_pool_kernel, t_s=tS, s_pad=s_pad),
        out_shape=jax.ShapeDtypeStruct((B, 1, H), jnp.float32),
        grid_spec=pltpu.PrefetchScalarGridSpec(
            num_scalar_prefetch=0,
            grid=grid,
            in_specs=[
                pl.BlockSpec((tB, tS, tH), lambda b, h, k: (b, k, h)),
                # Constant over (h, k): one mask DMA per batch tile.
                pl.BlockSpec((tB, 1, s_pad), lambda b, h, k: (b, 0, 0)),
            ],
            # Constant block index over k -> the f32 output tile stays
            # VMEM-resident across the whole reduction and doubles as the
            # accumulator; one HBM writeback per (b, h) tile.
            out_specs=pl.BlockSpec((tB, 1, tH), lambda b, h, k: (b, 0, h)),
        ),
        compiler_params=pltpu.CompilerParams(
            # Batch / hidden axes are independent (v7x may shard them across
            # its 2 TensorCores); the sequence axis accumulates.
            dimension_semantics=("parallel", "parallel", "arbitrary"),
            vmem_limit_bytes=vmem_limit,
        ),
    )(hidden, mask3)

    return out.reshape(B, H)                      # (B,1,H) -> (B,H), metadata only


def mean_pooling_ref(last_hidden_state, attention_mask):
    """Pure-JAX reference mirroring the PyTorch forward (f32 math)."""
    m = attention_mask.astype(jnp.float32)[..., None]
    sum_emb = jnp.sum(last_hidden_state.astype(jnp.float32) * m, axis=1)
    sum_mask = jnp.maximum(jnp.sum(m, axis=1), 1e-9)   # clamp(min=1e-9)
    return sum_emb / sum_mask


if __name__ == "__main__":
    key = jax.random.PRNGKey(0)
    k1, k2, k3, k4, k5, k6 = jax.random.split(key, 6)

    # --- Small shapes consistent with the module: true float32 inputs ------
    B, S, H = 2, 8, 32
    hidden = jax.random.normal(k1, (B, S, H), dtype=jnp.float32)
    mask = (jax.random.uniform(k2, (B, S)) > 0.3).astype(jnp.int32)

    out = jax.block_until_ready(mean_pooling(hidden, mask))
    ref = mean_pooling_ref(hidden, mask)
    assert out.shape == (B, H) and out.dtype == jnp.float32
    err = float(jnp.max(jnp.abs(out - ref)))
    assert jnp.allclose(out, ref, atol=5e-5, rtol=1e-4), err

    # --- float32, forced small tiles: multi-step S reduction + batch grid --
    B2, S2, H2 = 16, 256, 128
    hidden2 = jax.random.normal(k3, (B2, S2, H2), dtype=jnp.float32)
    mask2 = (jax.random.uniform(k4, (B2, S2)) > 0.5).astype(jnp.int32)
    out2 = jax.block_until_ready(
        mean_pooling(hidden2, mask2, tile_budget_bytes=128 * 1024))
    ref2 = mean_pooling_ref(hidden2, mask2)
    assert out2.shape == (B2, H2)
    err2 = float(jnp.max(jnp.abs(out2 - ref2)))
    assert jnp.allclose(out2, ref2, atol=5e-5, rtol=1e-4), err2

    # --- bfloat16, unaligned batch / sequence (whole-S fallback path) ------
    B3, S3, H3 = 3, 200, 96
    hidden3 = jax.random.normal(k5, (B3, S3, H3), dtype=jnp.bfloat16)
    amask3 = (jax.random.uniform(k6, (B3, S3)) > 0.4).astype(jnp.int32)
    out3 = jax.block_until_ready(mean_pooling(hidden3, amask3))
    ref3 = mean_pooling_ref(hidden3, amask3)
    assert out3.shape == (B3, H3)
    err3 = float(jnp.max(jnp.abs(out3 - ref3)))
    assert jnp.allclose(out3, ref3, atol=1e-4, rtol=1e-3), err3

    print("KERNEL_OK")
</pallas_src>

<mosaic_0001>
module attributes {stable_mosaic.version = 11 : i64} {
  func.func @mean_pool_kernel(%arg0: i32, %arg1: i32, %arg2: i32, %arg3: memref<1x8x32xf32, #tpu.memory_space<vmem>>, %arg4: memref<1x1x8xf32, #tpu.memory_space<vmem>>, %arg5: memref<1x1x32xf32, #tpu.memory_space<vmem>>) attributes {dimension_semantics = [#tpu.dimension_semantics<parallel>, #tpu.dimension_semantics<parallel>, #tpu.dimension_semantics<arbitrary>], iteration_bounds = array<i64: 2, 1, 1>, scalar_prefetch = 0 : i64, scratch_operands = 0 : i64, tpu.core_type = #tpu.core_type<tc>, window_params = [{transform_indices = @transform_0, window_bounds = array<i64: 1, 8, 32>}, {transform_indices = @transform_1, window_bounds = array<i64: 1, 1, 8>}, {transform_indices = @transform_2, window_bounds = array<i64: 1, 1, 32>}]} {
    %c0_i32 = arith.constant 0 : i32
    %0 = arith.cmpi eq, %arg2, %c0_i32 : i32
    %1 = arith.extui %0 : i1 to i32
    %c0_i32_0 = arith.constant 0 : i32
    %2 = arith.cmpi ne, %1, %c0_i32_0 : i32
    scf.if %2 {
      %cst_14 = arith.constant 0.000000e+00 : f32
      %12 = vector.broadcast %cst_14 : f32 to vector<1x1x32xf32>
      %c0_15 = arith.constant 0 : index
      %c0_16 = arith.constant 0 : index
      %c0_17 = arith.constant 0 : index
      %13 = vector.load %arg5[%c0_15, %c0_16, %c0_17] : memref<1x1x32xf32, #tpu.memory_space<vmem>>, vector<1x1x32xf32>
      tpu.vector_store %arg5[%c0_15, %c0_16, %c0_17], %12 {strides = array<i32>} : memref<1x1x32xf32, #tpu.memory_space<vmem>>, vector<1x1x32xf32>,
    } else {
    }
    %c0 = arith.constant 0 : index
    %c0_1 = arith.constant 0 : index
    %c0_2 = arith.constant 0 : index
    %3 = vector.load %arg3[%c0, %c0_1, %c0_2] : memref<1x8x32xf32, #tpu.memory_space<vmem>>, vector<1x8x32xf32>
    %c0_3 = arith.constant 0 : index
    %c0_4 = arith.constant 0 : index
    %c0_5 = arith.constant 0 : index
    %4 = vector.load %arg4[%c0_3, %c0_4, %c0_5] : memref<1x1x8xf32, #tpu.memory_space<vmem>>, vector<1x1x8xf32>
    %c0_6 = arith.constant 0 : index
    %c0_7 = arith.constant 0 : index
    %c0_8 = arith.constant 0 : index
    %5 = vector.load %arg5[%c0_6, %c0_7, %c0_8] : memref<1x1x32xf32, #tpu.memory_space<vmem>>, vector<1x1x32xf32>
    %cst = arith.constant dense<0.000000e+00> : vector<1x1x32xf32>
    %6 = tpu.matmul %4, %3, %cst {dimension_numbers = #tpu.dot_dimension_numbers<[2], [1], [1], [2], [0, 0, 0, 1, 1, 2], [0], [0]>, precision = #tpu.contract_precision<fp32>} : vector<1x1x8xf32>, vector<1x8x32xf32>, vector<1x1x32xf32> -> vector<1x1x32xf32>
    %7 = arith.addf %5, %6 : vector<1x1x32xf32>
    %c0_9 = arith.constant 0 : index
    %c0_10 = arith.constant 0 : index
    %c0_11 = arith.constant 0 : index
    %8 = vector.load %arg5[%c0_9, %c0_10, %c0_11] : memref<1x1x32xf32, #tpu.memory_space<vmem>>, vector<1x1x32xf32>
    tpu.vector_store %arg5[%c0_9, %c0_10, %c0_11], %7 {strides = array<i32>} : memref<1x1x32xf32, #tpu.memory_space<vmem>>, vector<1x1x32xf32>,
    %c0_i32_12 = arith.constant 0 : i32
    %9 = arith.cmpi eq, %arg2, %c0_i32_12 : i32
    %10 = arith.extui %9 : i1 to i32
    %c0_i32_13 = arith.constant 0 : i32
    %11 = arith.cmpi ne, %10, %c0_i32_13 : i32
    scf.if %11 {
      %c0_14 = arith.constant 0 : index
      %c0_15 = arith.constant 0 : index
      %c0_16 = arith.constant 0 : index
      %12 = vector.load %arg4[%c0_14, %c0_15, %c0_16] : memref<1x1x8xf32, #tpu.memory_space<vmem>>, vector<1x1x8xf32>
      %cst_17 = arith.constant dense<0.000000e+00> : vector<1x1xf32>
      %13 = vector.multi_reduction <add>, %12, %cst_17 [2] : vector<1x1x8xf32> to vector<1x1xf32>
      %14 = vector.shape_cast %13 : vector<1x1xf32> to vector<1x1x1xf32>
      %cst_18 = arith.constant 9.99999971E-10 : f32
      %15 = vector.broadcast %cst_18 : f32 to vector<1x1x1xf32>
      %16 = arith.maximumf %14, %15 : vector<1x1x1xf32>
      %c0_19 = arith.constant 0 : index
      %c0_20 = arith.constant 0 : index
      %c0_21 = arith.constant 0 : index
      %17 = vector.load %arg5[%c0_19, %c0_20, %c0_21] : memref<1x1x32xf32, #tpu.memory_space<vmem>>, vector<1x1x32xf32>
      %18 = vector.broadcast %16 : vector<1x1x1xf32> to vector<1x1x32xf32>
      %19 = arith.divf %17, %18 : vector<1x1x32xf32>
      %c0_22 = arith.constant 0 : index
      %c0_23 = arith.constant 0 : index
      %c0_24 = arith.constant 0 : index
      %20 = vector.load %arg5[%c0_22, %c0_23, %c0_24] : memref<1x1x32xf32, #tpu.memory_space<vmem>>, vector<1x1x32xf32>
      tpu.vector_store %arg5[%c0_22, %c0_23, %c0_24], %19 {strides = array<i32>} : memref<1x1x32xf32, #tpu.memory_space<vmem>>, vector<1x1x32xf32>,
    } else {
    }
    return
  }
  func.func @transform_0(%arg0: i32, %arg1: i32, %arg2: i32) -> (i32, i32, i32) {
    %c0_i32 = arith.constant 0 : i32
    return %arg0, %arg2, %arg1 : i32, i32, i32
  }
  func.func @transform_1(%arg0: i32, %arg1: i32, %arg2: i32) -> (i32, i32, i32) {
    %c0_i32 = arith.constant 0 : i32
    %c0_i32_0 = arith.constant 0 : i32
    %c0_i32_1 = arith.constant 0 : i32
    return %arg0, %c0_i32, %c0_i32_0 : i32, i32, i32
  }
  func.func @transform_2(%arg0: i32, %arg1: i32, %arg2: i32) -> (i32, i32, i32) {
    %c0_i32 = arith.constant 0 : i32
    %c0_i32_0 = arith.constant 0 : i32
    return %arg0, %c0_i32, %arg1 : i32, i32, i32
  }
}

</mosaic_0001>

<bundles_post_ra>
// kernel: mean_pooling.1
= control target key start
LH: loop header
LB: loop body
LE: loop exit
PB: predicated region body
PF: predicated region fallthrough
CT: control target
= control target key end

     0   :  { %7 = vsyncpa [#allocation3], 0  ;;  %s1224_s0 = inlined_call_operand.hbm [shape: f32[2,8,32], index: 0, kind: input, shape index: {}]   ;;  %s1225_s1 = inlined_call_operand.vmem [shape: f32[2,1,8], index: 1, kind: input, shape index: {}]   ;;  %s1226_s2 = inlined_call_operand.hbm [shape: f32[2,1,32], index: 2, kind: output, shape index: {}]  }
   0x1   :  { %9 = vsyncpa [#allocation3 + $0x1], 0 }
   0x2   :  { %10 = vsyncpa [#allocation4], 0 }
   0x3   :  { %12 = vsyncpa [#allocation4 + $0x1], 0  ;;  %s1029_s9 = smov 0   ;;  %s1031_s10 = smov 0  }
   0x4   :  { %s1033_s11 = smov 0   ;;  %s1035_s12 = smov 0  }
   0x5   :  { %s1037_s13 = smov 0   ;;  %s1039_s14 = smov 0  }
   0x6 LB: > { %s777_s15 = sadd.s32 4294967295, %s1008_s14   ;;  %s778_s16 = sadd.s32 4294967294, %s1008_s14   ;;  %s1008_s14 = sphi %s1039_s14, %s18_s14   ;;  %s1004_s13 = sphi %s1037_s13, %s1242_s13   ;;  %s1000_s12 = sphi %s1035_s12, %s1241_s12   ;;  %s996_s11 = sphi %s1033_s11, %s1240_s11   ;;  %s992_s10 = sphi %s1031_s10, %s1239_s10   ;;  %s988_s9 = sphi %s1029_s9, %s1238_s9  }
   0x7   : > { %s37_s17 = sadd.s32 1, %s1004_s13  ;;  %s48_s18 = sadd.s32 1, %s996_s11 }
   0x8   : > { %p39_p0 = scmp.ge.s32.totalorder %s37_s17, 2  ;;  %p55_p1 = scmp.ne.s32.totalorder %s996_s11, %s992_s10 }
   0x9   : > { %p56_p2 = scmp.eq.s32.totalorder %s1008_s14, 0  ;;  %p61_p3 = scmp.ne.s32.totalorder %s992_s10, %s988_s9 }
   0xa   : > { %s1244_s17 = smov (%p39_p0, %s37_s17), 0  ;;  %p62_p5 = scmp.eq.s32.totalorder %s777_s15, 0 }
   0xb   : > { %p1070_p4 = por %p56_p2, %p55_p1  ;;  %s41_s20 = ssub.s32 %s1004_s13, %s1244_s17 }
   0xc   : > { %p113_p6 = scmp.eq.s32.totalorder %s777_s15, 1  ;;  %p46_p7 = scmp.eq.s32.totalorder %s41_s20, 0 }
   0xd   : > { %p1076_p8 = por %p62_p5, %p61_p3  ;;  %p119_p10 = scmp.eq.s32.totalorder %s778_s16, 1 }
   0xe   : > { %p1080_p9 = por %p113_p6, %p55_p1  ;;  %p842_p13 = scmp.lt.s32.totalorder %s1008_s14, 2 }
   0xf   : > { %s1085_s23 = scalar_select %p46_p7, %s996_s11, %s48_s18  }
  0x10   : > { %s1230_s22 = scalar_select %p1080_p9, 1, 0 }
  0x11   : > { %p1087_p11 = por %p119_p10, %p61_p3  ;;  %s139_s25 = sand.u32 1, %s996_s11  }
  0x12   : > { %s781_s26 = sshll.u32 %s139_s25, 3  ;;  %s782_s27 = sshll.u32 %s1004_s13, 7 }
  0x13   : > { %s1231_s24 = scalar_select %p1087_p11, 1, 0 }
  0x14   : > { %s1098_s30 = scalar_lea.hbm %s1224_s0, %s782_s27  ;;  %s143_s3 = scalar_lea.vmem [#allocation2], %s781_s26 }
  0x15   : > { %s152_s4 = sshll.u32 %s143_s3, 4  ;;  %p1104_p0 = pnand %p842_p13, %p1070_p4  ;;  %s1100_s4 = int_to_ptr.vmem [resolvable:$true] %s152_s4 }
  0x16   : > { %s140_s6 = scalar_lea.sflag [#allocation3], %s139_s25  ;;  %s896_s7 = scalar_lea.hbm %s1098_s30, 128 }
  0x17   : > { %p897_p3 = scmp.ne.s32.totalorder %s1098_s30, %s896_s7  ;;  %p898_p5 = pneg %p1104_p0 }
  0x18   : > { %s901_s16 = scalar_lea.hbm %s1224_s0, 256  ;;  %p902_p4 = scmp.lt.u32.totalorder %s1098_s30, %s1224_s0 }
  0x19   : > { %p899_p6 = pnand %p898_p5, %p897_p3  ;;  %p903_p10 = scmp.lt.u32.totalorder %s901_s16, %s896_s7 }
  0x1a   : > { %p905_p12 = scmp.lt.u32.totalorder %s896_s7, %s1098_s30 }
  0x1b   : > { %p900_p7 = pneg %p899_p6  ;;  %p904_p13 = por %p903_p10, %p902_p4 }
  0x1d   : > { %p906_p1 = por %p905_p12, %p904_p13 }
  0x1f   : > { %p907_p2 = pnand %p906_p1, %p900_p7 }
  0x21   : > { %910 = shalt.err (!%p907_p2)
}
  0x22   : > { %s911_s20 = scalar_lea.vmem %s1100_s4, 128  ;;  %s1010_s25 = smov [#allocation2]  }
  0x23   : > { %p912_p3 = scmp.ne.s32.totalorder %s1100_s4, %s911_s20  ;;  %s916_s26 = sshll.u32 %s1010_s25, 4  ;;  %s917_s26 = int_to_ptr.vmem [resolvable:$false] %s916_s26 }
  0x24   : > { %s918_s27 = scalar_lea.vmem %s917_s26, 256  ;;  %p919_p9 = scmp.lt.s32.totalorder %s1100_s4, %s917_s26 }
  0x25   : > { %p914_p6 = pnand %p912_p3, %p898_p5  ;;  %p920_p4 = scmp.lt.s32.totalorder %s918_s27, %s911_s20 }
  0x27   : > { %p915_p11 = pneg %p914_p6  ;;  %p921_p10 = por %p920_p4, %p919_p9 }
  0x29   : > { %p922_p12 = pnand %p921_p10, %p915_p11 }
  0x2b   : > { %925 = shalt.err (!%p922_p12)
}
  0x2c   : > { %837 = dma.hbm_to_vmem [thread:$0]  (!%p1104_p0), %s1098_s30, 128, %s1100_s4, %s140_s6  }
  0x2d   : > { %p1233_p1 = scmp.lt.s32.totalorder %s1008_s14, 3  ;;  %p1234_p2 = scmp.ge.s32.totalorder %s1008_s14, 1 }
  0x2f   : > { %p164_p5 = pnand %p1234_p2, %p1233_p1 }
  0x30   : > { %s1140_s28 = sand.u32 (!%p164_p5), 1, %s992_s10  }
  0x31   : > { %167 = sbr.rel (%p164_p5) target bundleno = 324 (0x144), region = 28  ;;  %s784_s29 = sshll.u32 (!%p164_p5), %s1140_s28, 3 }
  0x32   : > { %s170_s3 = scalar_lea.sflag (!%p164_p5), [#allocation3], %s1140_s28  ;;  %s173_s7 = scalar_lea.vmem (!%p164_p5), [#allocation2], %s784_s29 }
  0x38   : > { %979 = dma.done.wait (%p1076_p8), %s170_s3, 128  }
  0x39   : > { %981 = vsyncadd (%p1076_p8), %s170_s3, 4294967168  ;;  %p196_p9 = scmp.lt.s32.totalorder %s1000_s12, 1  ;;  %v1011_v0 = vmov 0.0   ;;  %vm1012_vm0 = vmmov 0   ;;  %vm208_vm1 = vcmask 64512   ;;  %vm665_vm2 = vcmask 57344  }
  0x3a   : > { %800 = vmatprep.subr.mxu0 %v1011_v0  ;;  %805 = vmatprep.subr.mxu1 %v1011_v0  ;;  %v205_v1 = vld [vmem:[%s173_s7] sm:$0xff]  ;;  %vm203_vm3 = vcmask 253952   ;;  %s1160_s21 = scalar_lea.vmem [#allocation5], %s1140_s28  ;;  %s785_s8 = sshll.u32 %s1000_s12, 4 }
  0x3b   : > { %802 = vmatprep.mubr.msk.f32.mxu0 %vm1012_vm0, %v1011_v0  ;;  %807 = vmatprep.mubr.msk.f32.mxu1 %vm1012_vm0, %v1011_v0  ;;  %s197_s30 = scalar_select %p196_p9, %s1000_s12, 1  ;;  %v213_v4 = vand.u32 4294901760, %v205_v1  ;;  %204 = vst.msk [vmem:[%s1160_s21] sm:$0x1] %vm203_vm3, %v1011_v0 }
  0x3c   : > { %s688_s15 = sshll.u32 %s1160_s21, 4  ;;  %s1173_s19 = scalar_lea.hbm %s1226_s2, %s785_s8  ;;  %s1175_s15 = int_to_ptr.vmem [resolvable:$true] %s688_s15 }
  0x3d   : > { %s198_s6 = scalar_lea.vmem %s1225_s1, %s197_s30  ;;  %801 = vmatpush3.msra.mxu0 %v213_v4  ;;  %v290_v8 = vsub.f32 %v205_v1, %v213_v4  ;;  %s675_s20 = scalar_lea.sflag [#allocation4], %s1140_s28 }
  0x3e   : > { %v206_v2 = vld [vmem:[%s198_s6] sm:$0x1]  ;;  %810 = vmatprep.subr.mxu0 %v1011_v0  ;;  %s926_s25 = scalar_lea.vmem %s1175_s15, 16  ;;  %p1235_p11 = scmp.ne.s32.totalorder %s1230_s22, 0 }
  0x3f   : > { %v664_v3 = vld [vmem:[%s198_s6] sm:$0x1]  ;;  %v210_v5 = vsel %vm208_vm1, %v206_v2, 0  ;;  %v291_v10 = vand.u32 4294901760, %v290_v8  ;;  %p927_p8 = scmp.ne.s32.totalorder %s1175_s15, %s926_s25  ;;  %s1013_s12 = smov [#allocation5]  }
  0x40   : > { %v666_v6 = vsel %vm665_vm2, %v664_v3, 0.0  ;;  %v278_v7 = vand.u32 4294901760, %v210_v5  ;;  %s930_s26 = sshll.u32 %s1013_s12, 4  ;;  %s931_s26 = int_to_ptr.vmem [resolvable:$false] %s930_s26 }
  0x41   : > { %667 = vadd.xlane.f32.xlu0 %v666_v6  ;;  %v292_v12 = vsub.f32 %v290_v8, %v291_v10  ;;  %p928_p0 = pnand %p927_p8, %p1235_p11  ;;  %s932_s27 = scalar_lea.vmem %s931_s26, 32 }
  0x42   : > { %v279_v9 = vsub.f32 %v210_v5, %v278_v7  ;;  %v207_v34 = vld [vmem:[%s1160_s21] sm:$0x1]  ;;  %p933_p13 = scmp.lt.s32.totalorder %s1175_s15, %s931_s26  ;;  %p934_p3 = scmp.lt.s32.totalorder %s932_s27, %s926_s25 }
  0x43   : > { %v293_v14 = vand.u32 4294901760, %v292_v12  ;;  %p929_p7 = pneg %p928_p0 }
  0x44   : > { %v280_v11 = vand.u32 4294901760, %v279_v9  ;;  %p935_p6 = por %p934_p3, %p933_p13 }
  0x45   : > { %806 = vmatpush3.msra.mxu1 %v293_v14 }
  0x46   : > { %v281_v13 = vsub.f32 %v279_v9, %v280_v11  ;;  %808 = vmatmul.mubr.f32.vlgmr.msra.gmra.mrb[0].mxu1 %v278_v7  ;;  %815 = vmatprep.subr.mxu1 %v1011_v0  ;;  %p936_p4 = pnand %p935_p6, %p929_p7 }
  0x47   : > { %816 = vmatpush3.msra.mxu1 %v213_v4  ;;  %817 = vmatprep.mubr.msk.f32.mxu1 %vm1012_vm0, %v1011_v0 }
  0x48   : > { %v282_v15 = vand.u32 4294901760, %v281_v13  ;;  %825 = vmatprep.subr.mxu1 %v1011_v0 }
  0x4a   : > { %803 = vmatmul.mubr.f32.vlgmr.msra.gmra.mrb[0].mxu0 %v282_v15  ;;  %818 = vmatmul.mubr.f32.vlgmr.msra.gmra.mrb[2].mxu1 %v280_v11 }
  0x4b   : > { %811 = vmatpush3.msra.mxu0 %v290_v8  ;;  %812 = vmatprep.mubr.msk.f32.mxu0 %vm1012_vm0, %v1011_v0 }
  0x4c   : > { %820 = vmatprep.subr.mxu0 %v1011_v0  ;;  %826 = vmatpush3.msra.mxu1 %v213_v4 }
  0x4d   : > { %827 = vmatprep.mubr.msk.f32.mxu1 %vm1012_vm0, %v1011_v0 }
  0x4e   : > { %813 = vmatmul.mubr.f32.vlgmr.msra.gmra.mrb[2].mxu0 %v279_v9  ;;  %828 = vmatmul.mubr.f32.vlgmr.msra.gmra.mrb[4].mxu1 %v278_v7 }
  0x4f   : > { %821 = vmatpush3.msra.mxu0 %v291_v10  ;;  %822 = vmatprep.mubr.msk.f32.mxu0 %vm1012_vm0, %v1011_v0 }
  0x52   : > { %823 = vmatmul.mubr.f32.vlgmr.msra.gmra.mrb[4].mxu0 %v278_v7 }
  0xce   : > { %v668_v21 = vpop.xlane.xlu0 %667 }
  0xcf   : > { %v669_v27 = vmax.f32 %v668_v21, 1e-09 }
  0xd1   : > { %894 = vrcp.f32 %v669_v27 }
  0xdb   : > { %v895_v37 = vpop.eup %894 }
 0x119   : > { %v360_v17 = vpop.f32.mrb[0].mxu1 }
 0x11a   : > { %v809_v20 = vpop.f32.mrb[1].mxu1 }
 0x11d   : > { %v284_v16 = vpop.f32.mrb[0].mxu0  ;;  %v508_v23 = vpop.f32.mrb[2].mxu1 }
 0x11e   : > { %v361_v18 = vadd.f32 %v360_v17, %v284_v16  ;;  %v804_v19 = vpop.f32.mrb[1].mxu0  ;;  %v819_v26 = vpop.f32.mrb[3].mxu1 }
 0x121   : > { %v434_v22 = vpop.f32.mrb[2].mxu0  ;;  %v654_v30 = vpop.f32.mrb[4].mxu1 }
 0x122   : > { %v435_v24 = vadd.f32 %v434_v22, %v361_v18  ;;  %v814_v25 = vpop.f32.mrb[3].mxu0  ;;  %v829_v33 = vpop.f32.mrb[5].mxu1 }
 0x124   : > { %v509_v28 = vadd.f32 %v508_v23, %v435_v24 }
 0x125   : > { %v582_v29 = vpop.f32.mrb[4].mxu0 }
 0x126   : > { %v583_v31 = vadd.f32 %v582_v29, %v509_v28  ;;  %v824_v32 = vpop.f32.mrb[5].mxu0 }
 0x128   : > { %v655_v35 = vadd.f32 %v654_v30, %v583_v31 }
 0x12a   : > { %v658_v36 = vadd.f32 %v655_v35, %v207_v34 }
 0x12c   : > { %660 = vst.msk [vmem:[%s1160_s21] sm:$0x1] %vm203_vm3, %v658_v36 }
 0x133   : > { %v670_v38 = vld [vmem:[%s1160_s21] sm:$0x1] }
 0x134   : > { %v672_v39 = vmul.f32 %v895_v37, %v670_v38 }
 0x136   : > { %673 = vst.msk [vmem:[%s1160_s21] sm:$0x1] %vm203_vm3, %v672_v39 }
 0x137   : > { %939 = shalt.err (!%p936_p4)
}
 0x138   : > { %s940_s28 = scalar_lea.hbm %s1173_s19, 16  ;;  %s944_s7 = scalar_lea.hbm %s1226_s2, 32 }
 0x139   : > { %p941_p10 = scmp.ne.s32.totalorder %s1173_s19, %s940_s28  ;;  %p945_p2 = scmp.lt.u32.totalorder %s1173_s19, %s1226_s2 }
 0x13a   : > { %p946_p5 = scmp.lt.u32.totalorder %s944_s7, %s940_s28  ;;  %p948_p8 = scmp.lt.u32.totalorder %s940_s28, %s1173_s19 }
 0x13b   : > { %p942_p12 = pnand %p941_p10, %p1235_p11 }
 0x13c   : > { %p947_p9 = por %p946_p5, %p945_p2 }
 0x13d   : > { %p943_p1 = pneg %p942_p12 }
 0x13e   : > { %p949_p0 = por %p948_p8, %p947_p9 }
 0x140   : > { %p950_p7 = pnand %p949_p0, %p943_p1 }
 0x142   : > { %953 = shalt.err (!%p950_p7)
}
 0x143   : > { %832 = dma.vmem_to_hbm [thread:$0]  (%p1235_p11), %s1175_s15, 16, %s1173_s19, %s675_s20  }
 0x144 PF: > { %s700_s5 = sand.u32 1, %s988_s9   ;;  %p1236_p13 = scmp.ne.s32.totalorder %s1231_s24, 0 }
 0x145   : > { %p1237_p3 = scmp.ge.s32.totalorder %s1008_s14, 2  ;;  %s701_s6 = scalar_lea.sflag [#allocation4], %s700_s5 }
 0x147   : > { %p839_p6 = pnand %p1237_p3, %p1236_p13 }
 0x149   : > { %983 = dma.done.wait (!%p839_p6), %s701_s6, 16  }
 0x14a   : > { %985 = vsyncadd (!%p839_p6), %s701_s6, 4294967280  ;;  %s18_s14 = sadd.s32 1, %s1008_s14   ;;  %s1238_s9 = smov %s992_s10 }
 0x14b   : > { %p15_p4 = scmp.ge.s32.totalorder %s18_s14, 4   ;;  %s1239_s10 = smov %s996_s11 }
 0x14c   : > { %s1240_s11 = smov %s1085_s23  ;;  %s1241_s12 = smov %s1004_s13 }
 0x14d   : > { %s1242_s13 = smov %s1244_s17  ;;  %17 = sbr.rel (!%p15_p4) target bundleno = 6 (0x6), region = 84 }
 0x154   :  { %705 = vsyncpa [#allocation3], 1 }
 0x155   :  { %707 = vsyncpa [#allocation3 + $0x1], 1 }
 0x156   :  { %708 = vsyncpa [#allocation4], 1 }
 0x157   :  { %710 = vsyncpa [#allocation4 + $0x1], 1 }

</bundles_post_ra>
